<compile_context>
chip_gen: v7x
topology: tpu7x:2x2x1
jax: 0.10.0
libtpu: 0.0.40
codegen_flags: <defaults>
</compile_context>

<pallas_src>
import functools

import jax
import jax.numpy as jnp
from jax.experimental import pallas as pl
from jax.experimental.pallas import tpu as pltpu

LANES = 128
SUBLANES = 8
_MiB = 1024 * 1024


def _tpu_config():
    """Best-effort (VMEM capacity, TensorCore count) query with safe fallbacks."""
    vmem_bytes = 128 * _MiB
    num_cores = 1
    try:
        info = pltpu.get_tpu_info()
        vmem_bytes = int(getattr(info, "vmem_capacity_bytes", vmem_bytes))
        for name in ("num_cores", "core_count", "num_tensorcores",
                     "tensorcore_count"):
            val = getattr(info, name, None)
            if val:
                num_cores = int(val)
                break
    except Exception:   # older jax / query unavailable -> conservative defaults
        pass
    return vmem_bytes, num_cores


def _sublane_multiple(dtype):
    """Minimum sublane (second-minor) multiple for a streamed dtype."""
    itemsize = jnp.dtype(dtype).itemsize
    return SUBLANES * max(1, 4 // max(1, itemsize))   # f32->8, bf16->16, u8->32


def _focal_kernel(o_ref, t_ref, *rest, gamma, ignore_index, eps, n_valid,
                  tiles_per_core, tm, has_weights, multi_core):
    if has_weights:
        w_ref, sum_ref, cnt_ref = rest
    else:
        w_ref = None
        sum_ref, cnt_ref = rest

    if multi_core:
        c = pl.program_id(0)     # TensorCore axis (CORE_PARALLEL)
        i = pl.program_id(1)     # row-tile (reduction) axis
    else:
        c = 0
        i = pl.program_id(0)

    @pl.when(i == 0)
    def _():
        sum_ref[...] = jnp.zeros_like(sum_ref)
        cnt_ref[...] = jnp.zeros_like(cnt_ref)

    logical_tile = c * tiles_per_core + i           # unclamped tile index
    tile_end = (logical_tile + 1) * (tm * LANES)    # one past this tile's last elem

    # Compare in f32: 255 (and any realistic target value) is exact in f32, and
    # it avoids sub-32-bit integer vector compares for uint8 targets.
    t = t_ref[...].astype(jnp.float32)
    not_ignored = t != float(ignore_index)

    o = o_ref[...].astype(jnp.float32)
    s = jnp.clip(jax.nn.sigmoid(o), eps, 1.0 - eps)
    tc = jnp.clip(t, eps, 1.0 - eps)
    pt = (1.0 - tc) * (1.0 - s) + tc * s

    one_minus_pt = 1.0 - pt
    if gamma == 2:
        focal = one_minus_pt * one_minus_pt          # plain VPU multiply
    else:
        focal = one_minus_pt ** gamma                # int gamma -> integer_pow

    base = -focal * jnp.log(pt)
    if has_weights:
        base = base * w_ref[...].astype(jnp.float32)

    def _accumulate(loss, maskf):
        # (tm,128) -> (tm//8, 8, 128); summing axis 0 is pure elementwise vreg
        # adds (no per-step cross-lane XLU reduction); accumulate into the
        # resident (8,128) output blocks.
        sum_ref[...] += loss.reshape(tm // SUBLANES, SUBLANES, LANES).sum(axis=0)
        cnt_ref[...] += maskf.reshape(tm // SUBLANES, SUBLANES, LANES).sum(axis=0)

    # Fast path: interior tiles lie fully inside the real element range, so no
    # iota bounds mask is needed and masking is a multiply, not a select.
    @pl.when(tile_end <= n_valid)
    def _interior():
        maskf = not_ignored.astype(jnp.float32)
        _accumulate(base * maskf, maskf)

    # Slow path: only the boundary tile (and any clamped duplicate on the core
    # axis) builds the global-index mask.  jnp.where (not multiply) is used so
    # OOB-read garbage / padding can never leak NaNs via 0 * NaN.
    @pl.when(tile_end > n_valid)
    def _tail():
        row = jax.lax.broadcasted_iota(jnp.int32, (tm, LANES), 0)
        lane = jax.lax.broadcasted_iota(jnp.int32, (tm, LANES), 1)
        elem_idx = logical_tile * (tm * LANES) + row * LANES + lane
        valid = not_ignored & (elem_idx < n_valid)
        _accumulate(jnp.where(valid, base, 0.0), valid.astype(jnp.float32))


def focal_loss_2d(outputs, targets, weights=1.0, *, gamma=2, ignore_index=255,
                  eps=1e-6, num_cores=None):
    """Matches FocalLoss2d.forward(outputs, targets, weights).

    Caller contract (performance): pass `outputs`/`targets`/`weights` in their
    narrowest upstream dtype (e.g. bf16 logits, uint8 targets) — the kernel
    streams them as-is and upcasts to f32 in vregs.  The kernel is HBM-bound,
    so fewer bytes per element is the biggest lever.

    Returns NaN if every element equals `ignore_index` (same as the reference).
    """
    o = outputs.reshape(-1)
    t = targets.reshape(-1)
    n = o.shape[0]
    # In-kernel element indexing is int32.
    assert n < 2**31 - 2**24, "input too large for int32 in-kernel indexing"

    # Scalar weight (default 1.0): don't stream a tensor of ones; the weighted
    # mean is just w * mean(loss).
    w = jnp.asarray(weights)
    scalar_weight = w.size == 1
    if scalar_weight:
        w_flat = None
        w_scale = w.reshape(()).astype(jnp.float32)
    else:
        # TODO(synk): per-class (C,) weights could be prefetched into SMEM via
        # PrefetchScalarGridSpec instead of streaming a dense broadcast tensor.
        if w.shape != outputs.shape:
            w = jnp.broadcast_to(w, outputs.shape)
        w_flat = w.reshape(-1)
        w_scale = None

    vmem_bytes, detected_cores = _tpu_config()
    if num_cores is None:
        num_cores = detected_cores
    num_cores = max(1, int(num_cores))

    # Block size: ~1 MiB/stream/buffer on 64-MiB-VMEM chips (v7x), ~2 MiB on
    # 128-MiB chips (v5e/v6e).  2-3 double-buffered streams stay well under the
    # raised VMEM limit below in both cases.
    max_tm = 2048 if vmem_bytes <= 64 * _MiB else 4096

    # Row padding granularity = worst sublane multiple of the streamed dtypes.
    dtypes = [o.dtype, t.dtype] + ([w_flat.dtype] if w_flat is not None else [])
    sub = max(_sublane_multiple(d) for d in dtypes)
    slab = sub * LANES

    # Only pad when n isn't already a multiple of the slab (common image sizes
    # are); padded slots fall in the tail tile and are masked by elem_idx < n.
    padded_n = -(-n // slab) * slab
    pad = padded_n - n
    if pad:
        o = jnp.pad(o, (0, pad))
        t = jnp.pad(t, (0, pad))
        if w_flat is not None:
            w_flat = jnp.pad(w_flat, (0, pad))

    rows = padded_n // LANES                         # multiple of `sub`
    o2 = o.reshape(rows, LANES)                      # native dtype, no extra cast
    t2 = t.reshape(rows, LANES)
    inputs = [o2, t2]
    if w_flat is not None:
        inputs.append(w_flat.reshape(rows, LANES))

    tm = min(max_tm, rows)                           # multiple of `sub`
    tiles_total = -(-rows // tm)
    tiles_per_core = -(-tiles_total // num_cores)
    multi_core = num_cores > 1

    if multi_core:
        def in_map(c, i):
            # Clamp so the DMA never walks past the array; duplicated tiles are
            # fully masked in-kernel (their logical element indices are >= n).
            return (jnp.minimum(c * tiles_per_core + i, tiles_total - 1), 0)
        tile_spec = pl.BlockSpec((tm, LANES), in_map)
        acc_spec = pl.BlockSpec((SUBLANES, LANES), lambda c, i: (c, 0))
        grid = (num_cores, tiles_per_core)
        core_sem = getattr(pltpu, "CORE_PARALLEL", "parallel")
        dim_sem = (core_sem, "arbitrary")
        out_rows = num_cores * SUBLANES
    else:
        tile_spec = pl.BlockSpec((tm, LANES), lambda i: (i, 0))
        acc_spec = pl.BlockSpec((SUBLANES, LANES), lambda i: (0, 0))
        grid = (tiles_total,)
        dim_sem = ("arbitrary",)
        out_rows = SUBLANES

    kernel = functools.partial(
        _focal_kernel,
        gamma=gamma, ignore_index=ignore_index, eps=float(eps), n_valid=n,
        tiles_per_core=tiles_per_core, tm=tm,
        has_weights=w_flat is not None, multi_core=multi_core,
    )

    # Leave generous headroom below physical VMEM (64 MiB on v7x, 128 MiB on
    # v5e/v6e) while comfortably exceeding the default scoped limit.
    vmem_limit = min(int(vmem_bytes * 3 // 4), 112 * _MiB)

    sum_out, cnt_out = pl.pallas_call(
        kernel,
        out_shape=(
            jax.ShapeDtypeStruct((out_rows, LANES), jnp.float32),
            jax.ShapeDtypeStruct((out_rows, LANES), jnp.float32),
        ),
        grid_spec=pltpu.PrefetchScalarGridSpec(
            num_scalar_prefetch=0,
            grid=grid,
            in_specs=[tile_spec] * len(inputs),
            out_specs=(acc_spec, acc_spec),
        ),
        compiler_params=pltpu.CompilerParams(
            dimension_semantics=dim_sem,
            vmem_limit_bytes=vmem_limit,
        ),
    )(*inputs)

    # Single cross-lane reduction, once, outside the kernel.
    mean = jnp.sum(sum_out) / jnp.sum(cnt_out)
    if scalar_weight:
        mean = mean * w_scale
    return mean.astype(jnp.float32)


def _reference(outputs, targets, weights, gamma=2, ignore_index=255, eps=1e-6):
    o = jax.nn.sigmoid(outputs.reshape(-1).astype(jnp.float32))
    t = targets.reshape(-1).astype(jnp.float32)
    w = jnp.broadcast_to(jnp.asarray(weights, jnp.float32).reshape(-1), o.shape)
    valid = t != ignore_index
    o = jnp.clip(o, eps, 1.0 - eps)
    tc = jnp.clip(t, eps, 1.0 - eps)
    pt = (1.0 - tc) * (1.0 - o) + tc * o
    loss = -((1.0 - pt) ** gamma) * jnp.log(pt) * w
    loss = jnp.where(valid, loss, 0.0)
    return jnp.sum(loss) / jnp.sum(valid.astype(jnp.float32))


if __name__ == "__main__":
    key = jax.random.PRNGKey(0)
    k_out, k_tgt, k_ign, k_out2, k_tgt2, k_ign2 = jax.random.split(key, 6)

    # Case 1: canonical (B, C, H, W) f32 logits / f32 targets.
    B, C, H, W = 2, 4, 16, 16
    outputs = jax.random.normal(k_out, (B, C, H, W), dtype=jnp.float32)
    targets = jax.random.bernoulli(k_tgt, 0.5, (B, C, H, W)).astype(jnp.float32)
    ignore_mask = jax.random.bernoulli(k_ign, 0.1, (B, C, H, W))
    targets = jnp.where(ignore_mask, 255.0, targets)
    weights = jnp.ones((B, C, H, W), dtype=jnp.float32)

    # Tensor-weights path (3 streams).
    loss = jax.block_until_ready(focal_loss_2d(outputs, targets, weights))
    ref = _reference(outputs, targets, weights)
    assert jnp.allclose(loss, ref, rtol=1e-5, atol=1e-6), (loss, ref)

    # Default scalar-weight path (2 streams, no weight tensor).
    loss_s = jax.block_until_ready(focal_loss_2d(outputs, targets))
    ref_s = _reference(outputs, targets, 1.0)
    assert jnp.allclose(loss_s, ref_s, rtol=1e-5, atol=1e-6), (loss_s, ref_s)

    # Case 2: ragged element count (exercises the tail-tile mask path) with
    # narrow upstream dtypes: bf16 logits, uint8 targets.
    B2, C2, H2, W2 = 2, 3, 13, 17
    out2 = jax.random.normal(k_out2, (B2, C2, H2, W2), dtype=jnp.float32)
    out2_bf16 = out2.astype(jnp.bfloat16)
    tgt2 = jax.random.bernoulli(k_tgt2, 0.5, (B2, C2, H2, W2)).astype(jnp.uint8)
    ign2 = jax.random.bernoulli(k_ign2, 0.1, (B2, C2, H2, W2))
    tgt2 = jnp.where(ign2, jnp.uint8(255), tgt2)

    loss2 = jax.block_until_ready(focal_loss_2d(out2_bf16, tgt2))
    ref2 = _reference(out2_bf16.astype(jnp.float32),
                      tgt2.astype(jnp.float32), 1.0)
    assert jnp.allclose(loss2, ref2, rtol=1e-5, atol=1e-6), (loss2, ref2)

    print("KERNEL_OK")
</pallas_src>

<mosaic_0001>
module attributes {stable_mosaic.version = 11 : i64} {
  func.func @_focal_kernel(%arg0: i32, %arg1: memref<16x128xf32, #tpu.memory_space<vmem>>, %arg2: memref<16x128xf32, #tpu.memory_space<vmem>>, %arg3: memref<16x128xf32, #tpu.memory_space<vmem>>, %arg4: memref<8x128xf32, #tpu.memory_space<vmem>>, %arg5: memref<8x128xf32, #tpu.memory_space<vmem>>) attributes {dimension_semantics = [#tpu.dimension_semantics<arbitrary>], iteration_bounds = array<i64: 1>, scalar_prefetch = 0 : i64, scratch_operands = 0 : i64, tpu.core_type = #tpu.core_type<tc>, window_params = [{transform_indices = @transform_0, window_bounds = array<i64: 16, 128>}, {transform_indices = @transform_1, window_bounds = array<i64: 16, 128>}, {transform_indices = @transform_2, window_bounds = array<i64: 16, 128>}, {pipeline_mode = #tpu.pipeline_mode<synchronous>, transform_indices = @transform_3, window_bounds = array<i64: 8, 128>}, {pipeline_mode = #tpu.pipeline_mode<synchronous>, transform_indices = @transform_4, window_bounds = array<i64: 8, 128>}]} {
    %c0_i32 = arith.constant 0 : i32
    %0 = arith.cmpi eq, %arg0, %c0_i32 : i32
    %1 = arith.extui %0 : i1 to i32
    %c0_i32_0 = arith.constant 0 : i32
    %2 = arith.cmpi ne, %1, %c0_i32_0 : i32
    scf.if %2 {
      %cst_20 = arith.constant 0.000000e+00 : f32
      %45 = vector.broadcast %cst_20 : f32 to vector<8x128xf32>
      %c0_21 = arith.constant 0 : index
      %c0_22 = arith.constant 0 : index
      %46 = vector.load %arg4[%c0_21, %c0_22] : memref<8x128xf32, #tpu.memory_space<vmem>>, vector<8x128xf32>
      tpu.vector_store %arg4[%c0_21, %c0_22], %45 {strides = array<i32>} : memref<8x128xf32, #tpu.memory_space<vmem>>, vector<8x128xf32>,
      %cst_23 = arith.constant 0.000000e+00 : f32
      %47 = vector.broadcast %cst_23 : f32 to vector<8x128xf32>
      %c0_24 = arith.constant 0 : index
      %c0_25 = arith.constant 0 : index
      %48 = vector.load %arg5[%c0_24, %c0_25] : memref<8x128xf32, #tpu.memory_space<vmem>>, vector<8x128xf32>
      tpu.vector_store %arg5[%c0_24, %c0_25], %47 {strides = array<i32>} : memref<8x128xf32, #tpu.memory_space<vmem>>, vector<8x128xf32>,
    } else {
    }
    %c0_i32_1 = arith.constant 0 : i32
    %3 = arith.addi %c0_i32_1, %arg0 : i32
    %c1_i32 = arith.constant 1 : i32
    %4 = arith.addi %3, %c1_i32 : i32
    %c2048_i32 = arith.constant 2048 : i32
    %5 = arith.muli %4, %c2048_i32 : i32
    %c0 = arith.constant 0 : index
    %c0_2 = arith.constant 0 : index
    %6 = vector.load %arg2[%c0, %c0_2] : memref<16x128xf32, #tpu.memory_space<vmem>>, vector<16x128xf32>
    %cst = arith.constant 2.550000e+02 : f32
    %7 = vector.broadcast %cst : f32 to vector<16x128xf32>
    %8 = arith.cmpf one, %6, %7 : vector<16x128xf32>
    %c0_3 = arith.constant 0 : index
    %c0_4 = arith.constant 0 : index
    %9 = vector.load %arg1[%c0_3, %c0_4] : memref<16x128xf32, #tpu.memory_space<vmem>>, vector<16x128xf32>
    %10 = arith.negf %9 : vector<16x128xf32>
    %11 = math.exp %10 : vector<16x128xf32>
    %cst_5 = arith.constant 1.000000e+00 : f32
    %12 = vector.broadcast %cst_5 : f32 to vector<16x128xf32>
    %13 = arith.addf %12, %11 : vector<16x128xf32>
    %14 = arith.divf %12, %13 : vector<16x128xf32>
    %cst_6 = arith.constant 9.99999997E-7 : f32
    %cst_7 = arith.constant 0.999998986 : f32
    %15 = vector.broadcast %cst_6 : f32 to vector<16x128xf32>
    %16 = arith.maximumf %15, %14 : vector<16x128xf32>
    %17 = vector.broadcast %cst_7 : f32 to vector<16x128xf32>
    %18 = arith.minimumf %17, %16 : vector<16x128xf32>
    %cst_8 = arith.constant 9.99999997E-7 : f32
    %cst_9 = arith.constant 0.999998986 : f32
    %19 = vector.broadcast %cst_8 : f32 to vector<16x128xf32>
    %20 = arith.maximumf %19, %6 : vector<16x128xf32>
    %21 = vector.broadcast %cst_9 : f32 to vector<16x128xf32>
    %22 = arith.minimumf %21, %20 : vector<16x128xf32>
    %cst_10 = arith.constant 1.000000e+00 : f32
    %23 = vector.broadcast %cst_10 : f32 to vector<16x128xf32>
    %24 = arith.subf %23, %22 : vector<16x128xf32>
    %cst_11 = arith.constant 1.000000e+00 : f32
    %25 = vector.broadcast %cst_11 : f32 to vector<16x128xf32>
    %26 = arith.subf %25, %18 : vector<16x128xf32>
    %27 = arith.mulf %24, %26 : vector<16x128xf32>
    %28 = arith.mulf %22, %18 : vector<16x128xf32>
    %29 = arith.addf %27, %28 : vector<16x128xf32>
    %cst_12 = arith.constant 1.000000e+00 : f32
    %30 = vector.broadcast %cst_12 : f32 to vector<16x128xf32>
    %31 = arith.subf %30, %29 : vector<16x128xf32>
    %32 = arith.mulf %31, %31 : vector<16x128xf32>
    %cst_13 = arith.constant 0.000000e+00 : f32
    %33 = vector.broadcast %cst_13 : f32 to vector<16x128xf32>
    %34 = arith.subf %33, %32 : vector<16x128xf32>
    %35 = math.log %29 : vector<16x128xf32>
    %36 = arith.mulf %34, %35 : vector<16x128xf32>
    %c0_14 = arith.constant 0 : index
    %c0_15 = arith.constant 0 : index
    %37 = vector.load %arg3[%c0_14, %c0_15] : memref<16x128xf32, #tpu.memory_space<vmem>>, vector<16x128xf32>
    %38 = arith.mulf %36, %37 : vector<16x128xf32>
    %c2048_i32_16 = arith.constant 2048 : i32
    %39 = arith.cmpi sle, %5, %c2048_i32_16 : i32
    %40 = arith.extui %39 : i1 to i32
    %c0_i32_17 = arith.constant 0 : i32
    %41 = arith.cmpi ne, %40, %c0_i32_17 : i32
    scf.if %41 {
      %45 = arith.extui %8 : vector<16x128xi1> to vector<16x128xi32>
      %46 = arith.sitofp %45 : vector<16x128xi32> to vector<16x128xf32>
      %47 = arith.mulf %38, %46 : vector<16x128xf32>
      %c0_20 = arith.constant 0 : index
      %c0_21 = arith.constant 0 : index
      %48 = vector.load %arg4[%c0_20, %c0_21] : memref<8x128xf32, #tpu.memory_space<vmem>>, vector<8x128xf32>
      %49 = vector.shape_cast %47 : vector<16x128xf32> to vector<2x8x128xf32>
      %cst_22 = arith.constant dense<0.000000e+00> : vector<8x128xf32>
      %50 = vector.multi_reduction <add>, %49, %cst_22 [0] : vector<2x8x128xf32> to vector<8x128xf32>
      %51 = arith.addf %48, %50 : vector<8x128xf32>
      %c0_23 = arith.constant 0 : index
      %c0_24 = arith.constant 0 : index
      %52 = vector.load %arg4[%c0_23, %c0_24] : memref<8x128xf32, #tpu.memory_space<vmem>>, vector<8x128xf32>
      tpu.vector_store %arg4[%c0_23, %c0_24], %51 {strides = array<i32>} : memref<8x128xf32, #tpu.memory_space<vmem>>, vector<8x128xf32>,
      %c0_25 = arith.constant 0 : index
      %c0_26 = arith.constant 0 : index
      %53 = vector.load %arg5[%c0_25, %c0_26] : memref<8x128xf32, #tpu.memory_space<vmem>>, vector<8x128xf32>
      %54 = vector.shape_cast %46 : vector<16x128xf32> to vector<2x8x128xf32>
      %cst_27 = arith.constant dense<0.000000e+00> : vector<8x128xf32>
      %55 = vector.multi_reduction <add>, %54, %cst_27 [0] : vector<2x8x128xf32> to vector<8x128xf32>
      %56 = arith.addf %53, %55 : vector<8x128xf32>
      %c0_28 = arith.constant 0 : index
      %c0_29 = arith.constant 0 : index
      %57 = vector.load %arg5[%c0_28, %c0_29] : memref<8x128xf32, #tpu.memory_space<vmem>>, vector<8x128xf32>
      tpu.vector_store %arg5[%c0_28, %c0_29], %56 {strides = array<i32>} : memref<8x128xf32, #tpu.memory_space<vmem>>, vector<8x128xf32>,
    } else {
    }
    %c2048_i32_18 = arith.constant 2048 : i32
    %42 = arith.cmpi sgt, %5, %c2048_i32_18 : i32
    %43 = arith.extui %42 : i1 to i32
    %c0_i32_19 = arith.constant 0 : i32
    %44 = arith.cmpi ne, %43, %c0_i32_19 : i32
    scf.if %44 {
      %45 = tpu.iota {dimensions = array<i32: 0>} : vector<16x128xi32>
      %46 = tpu.iota {dimensions = array<i32: 1>} : vector<16x128xi32>
      %c2048_i32_20 = arith.constant 2048 : i32
      %47 = arith.muli %3, %c2048_i32_20 : i32
      %c128_i32 = arith.constant 128 : i32
      %48 = vector.broadcast %c128_i32 : i32 to vector<16x128xi32>
      %49 = arith.muli %45, %48 : vector<16x128xi32>
      %50 = vector.broadcast %47 : i32 to vector<16x128xi32>
      %51 = arith.addi %50, %49 : vector<16x128xi32>
      %52 = arith.addi %51, %46 : vector<16x128xi32>
      %c2048_i32_21 = arith.constant 2048 : i32
      %53 = vector.broadcast %c2048_i32_21 : i32 to vector<16x128xi32>
      %54 = arith.cmpi slt, %52, %53 : vector<16x128xi32>
      %55 = arith.andi %8, %54 : vector<16x128xi1>
      %cst_22 = arith.constant 0.000000e+00 : f32
      %56 = vector.broadcast %cst_22 : f32 to vector<16x128xf32>
      %57 = arith.select %55, %38, %56 : vector<16x128xi1>, vector<16x128xf32>
      %58 = arith.extui %55 : vector<16x128xi1> to vector<16x128xi32>
      %59 = arith.sitofp %58 : vector<16x128xi32> to vector<16x128xf32>
      %c0_23 = arith.constant 0 : index
      %c0_24 = arith.constant 0 : index
      %60 = vector.load %arg4[%c0_23, %c0_24] : memref<8x128xf32, #tpu.memory_space<vmem>>, vector<8x128xf32>
      %61 = vector.shape_cast %57 : vector<16x128xf32> to vector<2x8x128xf32>
      %cst_25 = arith.constant dense<0.000000e+00> : vector<8x128xf32>
      %62 = vector.multi_reduction <add>, %61, %cst_25 [0] : vector<2x8x128xf32> to vector<8x128xf32>
      %63 = arith.addf %60, %62 : vector<8x128xf32>
      %c0_26 = arith.constant 0 : index
      %c0_27 = arith.constant 0 : index
      %64 = vector.load %arg4[%c0_26, %c0_27] : memref<8x128xf32, #tpu.memory_space<vmem>>, vector<8x128xf32>
      tpu.vector_store %arg4[%c0_26, %c0_27], %63 {strides = array<i32>} : memref<8x128xf32, #tpu.memory_space<vmem>>, vector<8x128xf32>,
      %c0_28 = arith.constant 0 : index
      %c0_29 = arith.constant 0 : index
      %65 = vector.load %arg5[%c0_28, %c0_29] : memref<8x128xf32, #tpu.memory_space<vmem>>, vector<8x128xf32>
      %66 = vector.shape_cast %59 : vector<16x128xf32> to vector<2x8x128xf32>
      %cst_30 = arith.constant dense<0.000000e+00> : vector<8x128xf32>
      %67 = vector.multi_reduction <add>, %66, %cst_30 [0] : vector<2x8x128xf32> to vector<8x128xf32>
      %68 = arith.addf %65, %67 : vector<8x128xf32>
      %c0_31 = arith.constant 0 : index
      %c0_32 = arith.constant 0 : index
      %69 = vector.load %arg5[%c0_31, %c0_32] : memref<8x128xf32, #tpu.memory_space<vmem>>, vector<8x128xf32>
      tpu.vector_store %arg5[%c0_31, %c0_32], %68 {strides = array<i32>} : memref<8x128xf32, #tpu.memory_space<vmem>>, vector<8x128xf32>,
    } else {
    }
    return
  }
  func.func @transform_0(%arg0: i32) -> (i32, i32) {
    %c0_i32 = arith.constant 0 : i32
    %c0_i32_0 = arith.constant 0 : i32
    return %arg0, %c0_i32 : i32, i32
  }
  func.func @transform_1(%arg0: i32) -> (i32, i32) {
    %c0_i32 = arith.constant 0 : i32
    %c0_i32_0 = arith.constant 0 : i32
    return %arg0, %c0_i32 : i32, i32
  }
  func.func @transform_2(%arg0: i32) -> (i32, i32) {
    %c0_i32 = arith.constant 0 : i32
    %c0_i32_0 = arith.constant 0 : i32
    return %arg0, %c0_i32 : i32, i32
  }
  func.func @transform_3(%arg0: i32) -> (i32, i32) {
    %c0_i32 = arith.constant 0 : i32
    %c0_i32_0 = arith.constant 0 : i32
    %c0_i32_1 = arith.constant 0 : i32
    return %c0_i32, %c0_i32_0 : i32, i32
  }
  func.func @transform_4(%arg0: i32) -> (i32, i32) {
    %c0_i32 = arith.constant 0 : i32
    %c0_i32_0 = arith.constant 0 : i32
    %c0_i32_1 = arith.constant 0 : i32
    return %c0_i32, %c0_i32_0 : i32, i32
  }
}

</mosaic_0001>

<bundles_post_ra>
// kernel: tpu_custom_call.1
= control target key start
LH: loop header
LB: loop body
LE: loop exit
PB: predicated region body
PF: predicated region fallthrough
CT: control target
= control target key end

     0   :  { %10 = vsyncpa [#allocation3], 0  ;;  %s463_s0 = inlined_call_operand.hbm [shape: f32[16,128], index: 0, kind: input, shape index: {}]   ;;  %s464_s1 = inlined_call_operand.hbm [shape: f32[16,128], index: 1, kind: input, shape index: {}]   ;;  %s465_s2 = inlined_call_operand.hbm [shape: f32[16,128], index: 2, kind: input, shape index: {}]   ;;  %s466_s3 = inlined_call_operand.hbm [shape: f32[8,128], index: 3, kind: output, shape index: {0}]   ;;  %s467_s4 = inlined_call_operand.hbm [shape: f32[8,128], index: 4, kind: output, shape index: {1}]  }
   0x1   :  { %11 = vsyncpa [#allocation6], 0 }
   0x2   :  { %12 = vsyncpa [#allocation4], 0 }
   0x3   :  { %13 = vsyncpa [#allocation10], 0  ;;  %s346_s15 = smov [#allocation5]   ;;  %s347_s17 = smov [#allocation2]  }
   0x4   :  { %s31_s16 = sshll.u32 %s346_s15, 4  ;;  %s19_s18 = sshll.u32 %s347_s17, 4  ;;  %s32_s16 = int_to_ptr.vmem [resolvable:$true] %s31_s16  ;;  %s379_s18 = int_to_ptr.vmem [resolvable:$true] %s19_s18 }
   0x5   :  { %s228_s21 = scalar_lea.hbm %s464_s1, 256 }
   0x6   :  { %p229_p0 = scmp.ne.s32.totalorder %s464_s1, %s228_s21  ;;  %p232_p1 = scmp.lt.u32.totalorder %s228_s21, %s464_s1 }
   0x8   :  { %p234_p2 = pnand %p232_p1, %p229_p0 }
   0xa   :  { %237 = shalt.err (!%p234_p2)
}
   0xb   :  { %s238_s26 = scalar_lea.vmem %s32_s16, 256  ;;  %p243_p4 = scmp.lt.s32.totalorder %s32_s16, %s32_s16 }
   0xc   :  { %p239_p3 = scmp.ne.s32.totalorder %s32_s16, %s238_s26  ;;  %p244_p5 = scmp.lt.s32.totalorder %s238_s26, %s238_s26 }
   0xe   :  { %p245_p6 = por %p244_p5, %p243_p4 }
  0x10   :  { %p246_p7 = pnand %p245_p6, %p239_p3 }
  0x12   :  { %249 = shalt.err (!%p246_p7)
}
  0x13   :  { %s348_s27 = smov 128   ;;  %s349_s28 = smov 8  }
  0x14   :  { %37 = dma.hbm_to_vmem [thread:$0]  %s464_s1, 256, %s32_s16, [#allocation6], %s348_s27, %s348_s27, %s349_s28  }
  0x15   :  { %s250_s7 = scalar_lea.hbm %s463_s0, 256 }
  0x16   :  { %p251_p8 = scmp.ne.s32.totalorder %s463_s0, %s250_s7  ;;  %p254_p9 = scmp.lt.u32.totalorder %s250_s7, %s463_s0 }
  0x18   :  { %p256_p10 = pnand %p254_p9, %p251_p8 }
  0x1a   :  { %259 = shalt.err (!%p256_p10)
}
  0x1b   :  { %s260_s12 = scalar_lea.vmem %s379_s18, 256  ;;  %p265_p12 = scmp.lt.s32.totalorder %s379_s18, %s379_s18 }
  0x1c   :  { %p261_p11 = scmp.ne.s32.totalorder %s379_s18, %s260_s12  ;;  %p266_p13 = scmp.lt.s32.totalorder %s260_s12, %s260_s12 }
  0x1e   :  { %p267_p0 = por %p266_p13, %p265_p12 }
  0x20   :  { %p268_p1 = pnand %p267_p0, %p261_p11 }
  0x22   :  { %271 = shalt.err (!%p268_p1)
}
  0x23   :  { %25 = dma.hbm_to_vmem [thread:$0]  %s463_s0, 256, %s379_s18, [#allocation3], %s348_s27, %s348_s27, %s349_s28  }
  0x24   :  { %s350_s14 = smov [#allocation7]   ;;  %s272_s19 = scalar_lea.hbm %s465_s2, 256 }
  0x25   :  { %s43_s15 = sshll.u32 %s350_s14, 4  ;;  %p273_p2 = scmp.ne.s32.totalorder %s465_s2, %s272_s19  ;;  %s44_s15 = int_to_ptr.vmem [resolvable:$true] %s43_s15 }
  0x26   :  { %p276_p3 = scmp.lt.u32.totalorder %s272_s19, %s465_s2 }
  0x28   :  { %p278_p4 = pnand %p276_p3, %p273_p2 }
  0x2a   :  { %281 = shalt.err (!%p278_p4)
}
  0x2b   :  { %s282_s24 = scalar_lea.vmem %s44_s15, 256  ;;  %p287_p6 = scmp.lt.s32.totalorder %s44_s15, %s44_s15 }
  0x2c   :  { %p283_p5 = scmp.ne.s32.totalorder %s44_s15, %s282_s24  ;;  %p288_p7 = scmp.lt.s32.totalorder %s282_s24, %s282_s24 }
  0x2e   :  { %p289_p8 = por %p288_p7, %p287_p6 }
  0x30   :  { %p290_p9 = pnand %p289_p8, %p283_p5 }
  0x32   :  { %293 = shalt.err (!%p290_p9)
}
  0x33   :  { %49 = dma.hbm_to_vmem [thread:$0]  %s465_s2, 256, %s44_s15, [#allocation6], %s348_s27, %s348_s27, %s349_s28  }
  0x34   :  { %338 = dma.done.wait [#allocation3], 256  }
  0x35   :  { %339 = vsyncadd [#allocation3], 4294967040 }
  0x36   :  { %340 = dma.done.wait [#allocation6], 512  }
  0x37   :  { %341 = vsyncadd [#allocation6], 4294966784  ;;  %v67_v0 = vld [vmem:[#allocation5] sm:$0xff]  ;;  %v68_v1 = vld [vmem:[#allocation5 + $0x8] sm:$0xff]  ;;  %v351_v6 = vmov 0.0   ;;  %s352_s25 = smov [#allocation9]  }
  0x38   :  { %v71_v2 = vld [vmem:[#allocation2] sm:$0xff]  ;;  %vm69_vm0 = vcmp.ne.f32.partialorder %v67_v0, 255.0  ;;  %vm70_vm1 = vcmp.ne.f32.partialorder %v68_v1, 255.0  ;;  %v72_v3 = vld [vmem:[#allocation2 + $0x8] sm:$0xff]  ;;  %s188_s2 = sshll.u32 %s352_s25, 4  ;;  %s189_s2 = int_to_ptr.vmem [resolvable:$true] %s188_s2 }
  0x39   :  { %v202_v4 = vmul.f32 -1.442695, %v71_v2  ;;  %v203_v5 = vmul.f32 -1.442695, %v72_v3  ;;  %v431_v7 = vsel %vm69_vm0, 1.0, %v351_v6  ;;  %v433_v8 = vsel %vm70_vm1, 1.0, %v351_v6  ;;  %p299_p11 = scmp.lt.s32.totalorder %s189_s2, %s189_s2 }
  0x3a   :  { %v134_v9 = vadd.f32 %v433_v8, %v431_v7  ;;  %s294_s26 = scalar_lea.vmem %s189_s2, 128 }
  0x3b   :  { %216 = vpow2.f32 %v202_v4  ;;  %p295_p10 = scmp.ne.s32.totalorder %s189_s2, %s294_s26  ;;  %p300_p12 = scmp.lt.s32.totalorder %s294_s26, %s294_s26 }
  0x3c   :  { %218 = vpow2.f32 %v203_v5  ;;  %136 = vst [vmem:[#allocation9] sm:$0xff] %v134_v9 }
  0x3d   :  { %p301_p13 = por %p300_p12, %p299_p11 }
  0x3f   :  { %p302_p0 = pnand %p301_p13, %p295_p10 }
  0x41   :  { %305 = shalt.err (!%p302_p0)
}
  0x42   :  { %s306_s29 = scalar_lea.hbm %s467_s4, 128 }
  0x43   :  { %p307_p1 = scmp.ne.s32.totalorder %s467_s4, %s306_s29  ;;  %p310_p2 = scmp.lt.u32.totalorder %s306_s29, %s467_s4 }
  0x45   :  { %p312_p3 = pnand %p310_p2, %p307_p1 }
  0x47   :  { %315 = shalt.err (!%p312_p3)
}
  0x48   :  { %191 = dma.vmem_to_hbm [thread:$0]  %s189_s2, 128, %s467_s4, [#allocation10]   ;;  %v217_v10 = vpop.eup %216  ;;  %v89_v14 = vmax.f32 %v67_v0, 1e-06  ;;  %v90_v15 = vmax.f32 %v68_v1, 1e-06 }
  0x49   :  { %v219_v11 = vpop.eup %218  ;;  %v79_v12 = vadd.f32 1.0, %v217_v10  ;;  %v115_v44 = vld [vmem:[#allocation7] sm:$0xff]  ;;  %v116_v46 = vld [vmem:[#allocation7 + $0x8] sm:$0xff]  ;;  %s353_s4 = smov [#allocation8]  }
  0x4a   :  { %v80_v13 = vadd.f32 1.0, %v219_v11  ;;  %v91_v16 = vmin.f32 %v89_v14, 0.999999  ;;  %v92_v18 = vmin.f32 %v90_v15, 0.999999  ;;  %s178_s10 = sshll.u32 %s353_s4, 4  ;;  %s179_s10 = int_to_ptr.vmem [resolvable:$true] %s178_s10 }
  0x4b   :  { %220 = vrcp.f32 %v79_v12  ;;  %s316_s11 = scalar_lea.vmem %s179_s10, 128  ;;  %p321_p5 = scmp.lt.s32.totalorder %s179_s10, %s179_s10 }
  0x4c   :  { %222 = vrcp.f32 %v80_v13  ;;  %v93_v23 = vsub.f32 1.0, %v91_v16  ;;  %v94_v25 = vsub.f32 1.0, %v92_v18  ;;  %p317_p4 = scmp.ne.s32.totalorder %s179_s10, %s316_s11  ;;  %p322_p6 = scmp.lt.s32.totalorder %s316_s11, %s316_s11 }
  0x4e   :  { %p323_p7 = por %p322_p6, %p321_p5 }
  0x50   :  { %p324_p8 = pnand %p323_p7, %p317_p4 }
  0x55   :  { %v221_v17 = vpop.eup %220 }
  0x56   :  { %v223_v19 = vpop.eup %222  ;;  %v85_v20 = vmax.f32 %v221_v17, 1e-06 }
  0x57   :  { %v86_v21 = vmax.f32 %v223_v19, 1e-06 }
  0x58   :  { %v87_v22 = vmin.f32 %v85_v20, 0.999999 }
  0x59   :  { %v88_v24 = vmin.f32 %v86_v21, 0.999999 }
  0x5a   :  { %v95_v26 = vsub.f32 1.0, %v87_v22  ;;  %v99_v27 = vmul.f32 %v91_v16, %v87_v22 }
  0x5b   :  { %v96_v28 = vsub.f32 1.0, %v88_v24  ;;  %v100_v29 = vmul.f32 %v92_v18, %v88_v24 }
  0x5c   :  { %v97_v30 = vmul.f32 %v95_v26, %v93_v23 }
  0x5d   :  { %v98_v31 = vmul.f32 %v96_v28, %v94_v25 }
  0x5e   :  { %v101_v32 = vadd.f32 %v99_v27, %v97_v30 }
  0x5f   :  { %v102_v33 = vadd.f32 %v100_v29, %v98_v31 }
  0x60   :  { %224 = vlog2.f32 %v101_v32  ;;  %v103_v34 = vsub.f32 1.0, %v101_v32 }
  0x61   :  { %226 = vlog2.f32 %v102_v33  ;;  %v104_v35 = vsub.f32 1.0, %v102_v33 }
  0x62   :  { %v105_v36 = vmul.f32 %v103_v34, %v103_v34 }
  0x63   :  { %v106_v37 = vmul.f32 %v104_v35, %v104_v35 }
  0x64   :  { %v107_v38 = vsub.f32 0.0, %v105_v36 }
  0x65   :  { %v108_v40 = vsub.f32 0.0, %v106_v37 }
  0x6a   :  { %v225_v39 = vpop.eup %224 }
  0x6b   :  { %v227_v41 = vpop.eup %226  ;;  %v110_v42 = vmul.f32 0.6931472, %v225_v39 }
  0x6c   :  { %v112_v43 = vmul.f32 0.6931472, %v227_v41 }
  0x6d   :  { %v113_v45 = vmul.f32 %v110_v42, %v107_v38 }
  0x6e   :  { %v114_v47 = vmul.f32 %v112_v43, %v108_v40 }
  0x6f   :  { %v117_v48 = vmul.f32 %v115_v44, %v113_v45 }
  0x70   :  { %v118_v49 = vmul.f32 %v116_v46, %v114_v47 }
  0x71   :  { %v127_v50 = vmul.f32 %v431_v7, %v117_v48 }
  0x72   :  { %v128_v51 = vmul.f32 %v433_v8, %v118_v49 }
  0x74   :  { %v130_v52 = vadd.f32 %v128_v51, %v127_v50 }
  0x76   :  { %132 = vst [vmem:[#allocation8] sm:$0xff] %v130_v52 }
  0x77   :  { %327 = shalt.err (!%p324_p8)
}
  0x78   :  { %s328_s13 = scalar_lea.hbm %s466_s3, 128 }
  0x79   :  { %p329_p9 = scmp.ne.s32.totalorder %s466_s3, %s328_s13  ;;  %p332_p10 = scmp.lt.u32.totalorder %s328_s13, %s466_s3 }
  0x7b   :  { %p334_p11 = pnand %p332_p10, %p329_p9 }
  0x7d   :  { %337 = shalt.err (!%p334_p11)
}
  0x7e   :  { %181 = dma.vmem_to_hbm [thread:$0]  %s179_s10, 128, %s466_s3, [#allocation4]  }
  0x7f   :  { %342 = dma.done.wait [#allocation4], 128  }
  0x80   :  { %343 = vsyncadd [#allocation4], 4294967168 }
  0x81   :  { %344 = dma.done.wait [#allocation10], 128  }
  0x82   :  { %345 = vsyncadd [#allocation10], 4294967168 }
  0x83   :  { %198 = vsyncpa [#allocation3], 1 }
  0x84   :  { %199 = vsyncpa [#allocation6], 1 }
  0x85   :  { %200 = vsyncpa [#allocation4], 1 }
  0x86   :  { %201 = vsyncpa [#allocation10], 1 }

</bundles_post_ra>
